<compile_context>
chip_gen: v7x
topology: tpu7x:2x2x1
jax: 0.10.0
libtpu: 0.0.40
codegen_flags: <defaults>
</compile_context>

<pallas_src>
import functools

import jax
import jax.numpy as jnp
from jax.experimental import pallas as pl
from jax.experimental.pallas import tpu as pltpu


def _round_up(n, m):
    return ((n + m - 1) // m) * m


def p_network_kernel(x_ref, wp_ref, out_ref, *, S1, H, A, r1, r2):
    """Fused 3-layer MLP: 3 MXU matmuls + VPU relu/clip, all VMEM resident.

    x_ref  : [TB, S+1]  state with a trailing ones column (folds layer-1 bias).
    wp_ref : [R, W]     packed weights; per-layer blocks start at 8-aligned rows:
                          rows [0,     S+1)        : w1 (last row = b1)   cols [0,H)
                          rows [r1,    r1+H+1)     : w2 (last row = b2)   cols [0,H)
                          rows [r1+r2, r1+r2+H+1)  : w3 (last row = b3)   cols [0,2A)
    out_ref: [TB, 2A]   lanes [0,A) = mean, lanes [A,2A) = clamped log_std.
    """
    wd = wp_ref.dtype
    x = x_ref[...]                                    # [TB, S+1]
    wp = wp_ref[...]                                  # [R, W] (tiny, stays in vregs)

    # Layer 1: bias is folded via the ones column of x, so no slice/broadcast needed.
    w1 = wp[0:S1, 0:H]
    h1 = jnp.maximum(jnp.dot(x, w1, preferred_element_type=jnp.float32), 0.0)

    # Layer 2.
    w2 = wp[r1:r1 + H, 0:H]
    b2 = wp[r1 + H:r1 + H + 1, 0:H].astype(jnp.float32)
    h2 = jnp.maximum(
        jnp.dot(h1.astype(wd), w2, preferred_element_type=jnp.float32) + b2, 0.0)

    # Head: one [H, 2A] matmul producing mean (lanes [0,A)) and log_std (lanes [A,2A)).
    w3 = wp[r1 + r2:r1 + r2 + H, 0:2 * A]
    b3 = wp[r1 + r2 + H:r1 + r2 + H + 1, 0:2 * A].astype(jnp.float32)
    out = jnp.dot(h2.astype(wd), w3, preferred_element_type=jnp.float32) + b3

    # Clamp only the log_std lanes; mean lanes pass through untouched.
    col = jax.lax.broadcasted_iota(jnp.int32, out.shape, 1)
    out_ref[...] = jnp.where(col >= A, jnp.clip(out, -20.0, 2.0), out).astype(out_ref.dtype)


def init_params(key, num_state, num_actions, hidden_dim, dtype=jnp.float32):
    """Xavier-uniform weights (gain=1), zero biases -- matches weights_init_.

    All three layers are packed ONCE into a single [R, W] buffer (bias as the last
    row of each layer block, rows padded to multiples of 8, common lane width
    W = max(hidden_dim, 2*num_actions)) so the forward pass issues exactly one
    weight DMA per call.  Use dtype=jnp.bfloat16 for the large-batch, bandwidth
    bound regime on v5e/v6e (accumulation stays f32 in the kernel).
    """
    S, H, A2 = num_state, hidden_dim, 2 * num_actions

    def xavier(k, fan_in, fan_out):
        bound = (6.0 / (fan_in + fan_out)) ** 0.5
        return jax.random.uniform(k, (fan_in, fan_out), jnp.float32, -bound, bound)

    k1, k2, k3 = jax.random.split(key, 3)
    w1a = jnp.concatenate([xavier(k1, S, H), jnp.zeros((1, H), jnp.float32)], axis=0)
    w2a = jnp.concatenate([xavier(k2, H, H), jnp.zeros((1, H), jnp.float32)], axis=0)
    w3a = jnp.concatenate([xavier(k3, H, A2), jnp.zeros((1, A2), jnp.float32)], axis=0)

    W = max(H, A2)
    r1 = _round_up(S + 1, 8)
    r2 = _round_up(H + 1, 8)
    r3 = _round_up(H + 1, 8)

    def pad_block(w, rows):
        return jnp.pad(w, ((0, rows - w.shape[0]), (0, W - w.shape[1])))

    packed = jnp.concatenate(
        [pad_block(w1a, r1), pad_block(w2a, r2), pad_block(w3a, r3)], axis=0)
    return packed.astype(dtype)


def p_network_forward(state, packed_w, num_actions, hidden_dim, *, batch_block=2048):
    """state: [B, num_state] -> (mean [B, A], log_std [B, A]) in float32."""
    B, S = state.shape
    H, A = hidden_dim, num_actions
    A2 = 2 * A
    S1 = S + 1
    r1 = _round_up(S1, 8)
    r2 = _round_up(H + 1, 8)
    wd = packed_w.dtype

    # Batch tiling: TB is a multiple of 8, defaults to up to 2048 rows per step, and
    # is capped at ~B/2 when B >= 16 so the 'parallel' grid axis has >= 2 steps to
    # shard across v7x's two TensorCores.  B is zero-padded up to grid*TB.
    B8 = _round_up(B, 8)
    if B8 <= 8:
        TB = 8
    else:
        TB = min(_round_up(batch_block, 8), max(8, (B8 // 2) // 8 * 8))
    grid = (pl.cdiv(B, TB),)
    Bp = grid[0] * TB

    # Fold layer-1 bias into the matmul: append a constant 1.0 column, then zero-pad
    # rows up to Bp (padded rows are discarded after the call).
    x = jnp.concatenate([state.astype(wd), jnp.ones((B, 1), wd)], axis=1)
    if Bp > B:
        x = jnp.pad(x, ((0, Bp - B), (0, 0)))

    # Explicit VMEM budget from the (lane/sublane padded) tile sizes.
    isz = jnp.dtype(wd).itemsize
    est = (2 * TB * _round_up(S1, 128) * isz                                   # input (double-buffered)
           + 2 * TB * _round_up(A2, 128) * 4                                   # output (double-buffered)
           + 2 * packed_w.shape[0] * _round_up(packed_w.shape[1], 128) * isz   # weights
           + 2 * TB * _round_up(H, 128) * 4)                                   # h1 / h2 intermediates
    vmem_limit = int(min(64 << 20, max(32 << 20, 2 * est)))

    flops = 2 * Bp * (S1 * H + H * H + H * A2)
    bytes_accessed = int(Bp * S1 * isz + packed_w.size * isz + Bp * A2 * 4)

    out = pl.pallas_call(
        functools.partial(p_network_kernel, S1=S1, H=H, A=A, r1=r1, r2=r2),
        grid=grid,
        in_specs=[
            pl.BlockSpec((TB, S1), lambda i: (i, 0)),          # state: tiled over batch
            pl.BlockSpec(packed_w.shape, lambda i: (0, 0)),    # weights: VMEM-resident
        ],
        out_specs=pl.BlockSpec((TB, A2), lambda i: (i, 0)),    # single lane-dense output
        out_shape=jax.ShapeDtypeStruct((Bp, A2), jnp.float32),
        compiler_params=pltpu.CompilerParams(
            dimension_semantics=("parallel",),
            vmem_limit_bytes=vmem_limit),
        cost_estimate=pl.CostEstimate(flops=flops, transcendentals=0,
                                      bytes_accessed=bytes_accessed),
    )(x, packed_w)

    mean = out[:B, :A]
    log_std = out[:B, A:]
    return mean, log_std


def p_network_ref(state, packed_w, num_actions, hidden_dim):
    """Pure-JAX reference (same packed-weight layout), for correctness checking."""
    S = state.shape[-1]
    H, A = hidden_dim, num_actions
    r1 = _round_up(S + 1, 8)
    r2 = _round_up(H + 1, 8)
    wp = packed_w.astype(jnp.float32)
    w1, b1 = wp[0:S, 0:H], wp[S, 0:H]
    w2, b2 = wp[r1:r1 + H, 0:H], wp[r1 + H, 0:H]
    w3, b3 = wp[r1 + r2:r1 + r2 + H, 0:2 * A], wp[r1 + r2 + H, 0:2 * A]
    h1 = jnp.maximum(state.astype(jnp.float32) @ w1 + b1, 0.0)
    h2 = jnp.maximum(h1 @ w2 + b2, 0.0)
    out = h2 @ w3 + b3
    return out[..., :A], jnp.clip(out[..., A:], -20.0, 2.0)


if __name__ == "__main__":
    num_state = 8
    num_actions = 4
    hidden_dim = 32
    batch = 8

    key = jax.random.PRNGKey(0)
    kp, kx = jax.random.split(key)
    packed = init_params(kp, num_state, num_actions, hidden_dim)
    state = jax.random.normal(kx, (batch, num_state), jnp.float32)

    mean, log_std = p_network_forward(state, packed, num_actions, hidden_dim)
    jax.block_until_ready((mean, log_std))

    mean_ref, log_std_ref = p_network_ref(state, packed, num_actions, hidden_dim)
    assert mean.shape == (batch, num_actions) and log_std.shape == (batch, num_actions)
    assert jnp.allclose(mean, mean_ref, atol=1e-5), "mean mismatch"
    assert jnp.allclose(log_std, log_std_ref, atol=1e-5), "log_std mismatch"

    print("KERNEL_OK")
</pallas_src>

<mosaic_0001>
module attributes {stable_mosaic.version = 11 : i64} {
  func.func @p_network_kernel(%arg0: i32, %arg1: memref<8x9xf32, #tpu.memory_space<vmem>>, %arg2: memref<96x32xf32, #tpu.memory_space<vmem>>, %arg3: memref<8x8xf32, #tpu.memory_space<vmem>>) attributes {dimension_semantics = [#tpu.dimension_semantics<parallel>], iteration_bounds = array<i64: 1>, scalar_prefetch = 0 : i64, scratch_operands = 0 : i64, tpu.core_type = #tpu.core_type<tc>, window_params = [{transform_indices = @transform_0, window_bounds = array<i64: 8, 9>}, {pipeline_mode = #tpu.pipeline_mode<synchronous>, transform_indices = @transform_1, window_bounds = array<i64: 96, 32>}, {transform_indices = @transform_2, window_bounds = array<i64: 8, 8>}]} {
    %c0 = arith.constant 0 : index
    %c0_0 = arith.constant 0 : index
    %0 = vector.load %arg1[%c0, %c0_0] : memref<8x9xf32, #tpu.memory_space<vmem>>, vector<8x9xf32>
    %c0_1 = arith.constant 0 : index
    %c0_2 = arith.constant 0 : index
    %1 = vector.load %arg2[%c0_1, %c0_2] : memref<96x32xf32, #tpu.memory_space<vmem>>, vector<96x32xf32>
    %2 = vector.extract_strided_slice %1 {offsets = [0, 0], sizes = [9, 32], strides = [1, 1]} : vector<96x32xf32> to vector<9x32xf32>
    %cst = arith.constant dense<0.000000e+00> : vector<8x32xf32>
    %3 = tpu.matmul %0, %2, %cst {dimension_numbers = #tpu.dot_dimension_numbers<[1], [0], [0], [1], [0, 0, 1, 1], [], []>} : vector<8x9xf32>, vector<9x32xf32>, vector<8x32xf32> -> vector<8x32xf32>
    %cst_3 = arith.constant 0.000000e+00 : f32
    %4 = vector.broadcast %cst_3 : f32 to vector<8x32xf32>
    %5 = arith.maximumf %3, %4 : vector<8x32xf32>
    %6 = vector.extract_strided_slice %1 {offsets = [16, 0], sizes = [32, 32], strides = [1, 1]} : vector<96x32xf32> to vector<32x32xf32>
    %7 = vector.extract_strided_slice %1 {offsets = [48, 0], sizes = [1, 32], strides = [1, 1]} : vector<96x32xf32> to vector<1x32xf32>
    %cst_4 = arith.constant dense<0.000000e+00> : vector<8x32xf32>
    %8 = tpu.matmul %5, %6, %cst_4 {dimension_numbers = #tpu.dot_dimension_numbers<[1], [0], [0], [1], [0, 0, 1, 1], [], []>} : vector<8x32xf32>, vector<32x32xf32>, vector<8x32xf32> -> vector<8x32xf32>
    %9 = vector.broadcast %7 : vector<1x32xf32> to vector<8x32xf32>
    %10 = arith.addf %8, %9 : vector<8x32xf32>
    %cst_5 = arith.constant 0.000000e+00 : f32
    %11 = vector.broadcast %cst_5 : f32 to vector<8x32xf32>
    %12 = arith.maximumf %10, %11 : vector<8x32xf32>
    %13 = vector.extract_strided_slice %1 {offsets = [56, 0], sizes = [32, 8], strides = [1, 1]} : vector<96x32xf32> to vector<32x8xf32>
    %14 = vector.extract_strided_slice %1 {offsets = [88, 0], sizes = [1, 8], strides = [1, 1]} : vector<96x32xf32> to vector<1x8xf32>
    %cst_6 = arith.constant dense<0.000000e+00> : vector<8x8xf32>
    %15 = tpu.matmul %12, %13, %cst_6 {dimension_numbers = #tpu.dot_dimension_numbers<[1], [0], [0], [1], [0, 0, 1, 1], [], []>} : vector<8x32xf32>, vector<32x8xf32>, vector<8x8xf32> -> vector<8x8xf32>
    %16 = vector.broadcast %14 : vector<1x8xf32> to vector<8x8xf32>
    %17 = arith.addf %15, %16 : vector<8x8xf32>
    %18 = tpu.iota {dimensions = array<i32: 1>} : vector<8x8xi32>
    %c4_i32 = arith.constant 4 : i32
    %19 = vector.broadcast %c4_i32 : i32 to vector<8x8xi32>
    %20 = arith.cmpi sge, %18, %19 : vector<8x8xi32>
    %cst_7 = arith.constant -2.000000e+01 : f32
    %cst_8 = arith.constant 2.000000e+00 : f32
    %21 = vector.broadcast %cst_7 : f32 to vector<8x8xf32>
    %22 = arith.maximumf %21, %17 : vector<8x8xf32>
    %23 = vector.broadcast %cst_8 : f32 to vector<8x8xf32>
    %24 = arith.minimumf %23, %22 : vector<8x8xf32>
    %25 = arith.select %20, %24, %17 : vector<8x8xi1>, vector<8x8xf32>
    %c0_9 = arith.constant 0 : index
    %c0_10 = arith.constant 0 : index
    %26 = vector.load %arg3[%c0_9, %c0_10] : memref<8x8xf32, #tpu.memory_space<vmem>>, vector<8x8xf32>
    tpu.vector_store %arg3[%c0_9, %c0_10], %25 {strides = array<i32>} : memref<8x8xf32, #tpu.memory_space<vmem>>, vector<8x8xf32>,
    return
  }
  func.func @transform_0(%arg0: i32) -> (i32, i32) {
    %c0_i32 = arith.constant 0 : i32
    %c0_i32_0 = arith.constant 0 : i32
    return %arg0, %c0_i32 : i32, i32
  }
  func.func @transform_1(%arg0: i32) -> (i32, i32) {
    %c0_i32 = arith.constant 0 : i32
    %c0_i32_0 = arith.constant 0 : i32
    %c0_i32_1 = arith.constant 0 : i32
    return %c0_i32, %c0_i32_0 : i32, i32
  }
  func.func @transform_2(%arg0: i32) -> (i32, i32) {
    %c0_i32 = arith.constant 0 : i32
    %c0_i32_0 = arith.constant 0 : i32
    return %arg0, %c0_i32 : i32, i32
  }
}

</mosaic_0001>

<bundles_post_ra>
// kernel: tpu_custom_call.1
= control target key start
LH: loop header
LB: loop body
LE: loop exit
PB: predicated region body
PF: predicated region fallthrough
CT: control target
= control target key end

     0   :  { %vm29_vm0 = vcmask 1040384   ;;  %v373_v2 = vmov 0.0|0.0   ;;  %vm374_vm1 = vmmov 1   ;;  %vm375_vm3 = vmmov 0   ;;  %s446_s0 = inlined_call_operand.vmem [shape: f32[8,9], index: 0, kind: input, shape index: {}]   ;;  %s447_s1 = inlined_call_operand.vmem [shape: f32[96,32], index: 1, kind: input, shape index: {}]   ;;  %s448_s2 = inlined_call_operand.hbm [shape: f32[8,8], index: 2, kind: output, shape index: {}]  }
   0x1   :  { %v13_v0 = vld [vmem:[%s447_s1] sm:$0xff]  ;;  %v14_v1 = vld [vmem:[%s447_s1 + $0x8] sm:$0xff]  ;;  %328 = vmatprep.subr.bf16.mxu0 %v373_v2  ;;  %vm330_vm2 = vmpackc.low %vm29_vm0, %vm374_vm1  ;;  %332 = vmatprep.subr.bf16.mxu1 %v373_v2  ;;  %v376_v5 = vmov 0.0  }
   0x2   :  { %v329_v3 = vpack.c.bf16 %v14_v1, %v13_v0  ;;  %v15_v4 = vld [vmem:[%s447_s1 + $0x10] sm:$0xff]  ;;  %303 = vmatprep.mubr.msk.f32.mxu0 %vm375_vm3, %v376_v5  ;;  %v16_v6 = vld [vmem:[%s447_s1 + $0x18] sm:$0xff]  ;;  %314 = vmatprep.mubr.msk.f32.mxu1 %vm375_vm3, %v376_v5 }
   0x3   :  { %7 = vsyncpa [#allocation3], 0  ;;  %v12_v7 = vld [vmem:[%s446_s0] sm:$0xff]  ;;  %vm25_vm4 = vcmask 72704   ;;  %v333_v8 = vpack.c.bf16 %v16_v6, %v15_v4  ;;  %v18_v10 = vld [vmem:[%s447_s1 + $0x28] sm:$0xff]  ;;  %vm108_vm5 = vcmask 261120   ;;  %v104_v21 = vlaneseq }
   0x4   :  { %331 = vmatpush3.bf16.msk.msra.mxu0 %vm330_vm2, %v329_v3  ;;  %v17_v9 = vld [vmem:[%s447_s1 + $0x20] sm:$0xff]  ;;  %v20_v12 = vld [vmem:[%s447_s1 + $0x38] sm:$0xff]  ;;  %v22_v18 = vld [vmem:[%s447_s1 + $0x48] sm:$0xff]  ;;  %s377_s6 = smov [#allocation2]   ;;  %vm266_vm7 = vcmask 64512  }
   0x5   :  { %338 = vmatprep.subr.bf16.mxu0 %v373_v2  ;;  %334 = vmatpush3.bf16.msra.mxu1 %v333_v8  ;;  %v336_v11 = vpack.c.bf16 %v18_v10, %v17_v9  ;;  %v21_v13 = vld [vmem:[%s447_s1 + $0x40] sm:$0xff]  ;;  %v23_v19 = vld [vmem:[%s447_s1 + $0x50] sm:$0xff]  ;;  %v105_v22 = vshrl.u32 %v104_v21, 7  ;;  %v24_v30 = vld [vmem:[%s447_s1 + $0x58] sm:$0xff]  ;;  %v261_v33 = vand.u32 127, %v104_v21  ;;  %s274_s7 = sshll.u32 %s377_s6, 4  ;;  %s275_s7 = int_to_ptr.vmem [resolvable:$true] %s274_s7 }
   0x6   :  { %335 = vmatprep.subr.bf16.mxu1 %v373_v2  ;;  %v339_v14 = vpack.c.bf16 %v21_v13, %v20_v12  ;;  %v342_v20 = vpack.c.bf16 %v23_v19, %v22_v18  ;;  %v19_v24 = vld [vmem:[%s447_s1 + $0x30] sm:$0xff]  ;;  %s349_s8 = scalar_lea.vmem %s275_s7, 128  ;;  %p354_p1 = scmp.lt.s32.totalorder %s275_s7, %s275_s7 }
   0x7   :  { %304 = vmatmul.mubr.msk.f32.vlgmr.msra.gmra.mrb[0].mxu0 %vm25_vm4, %v12_v7  ;;  %v106_v23 = vsub.s32 0, %v105_v22  ;;  %vm262_vm6 = vcmp.ge.s32.totalorder %v261_v33, 4  ;;  %p350_p0 = scmp.ne.s32.totalorder %s275_s7, %s349_s8  ;;  %p355_p2 = scmp.lt.s32.totalorder %s349_s8, %s349_s8 }
   0x8   :  { %325 = vmatprep.mubr.msk.f32.mxu0 %vm375_vm3, %v376_v5  ;;  %340 = vmatpush3.bf16.msra.mxu0 %v339_v14 }
   0x9   :  { %337 = vmatpush3.bf16.msra.mxu1 %v336_v11  ;;  %341 = vmatprep.subr.bf16.mxu0 %v373_v2  ;;  %v107_v25 = vrot.slane %v19_v24, %v106_v23  ;;  %v186_v31 = vrot.slane %v24_v30, %v106_v23  ;;  %p356_p3 = por %p355_p2, %p354_p1 }
   0xb   :  { %p357_p4 = pnand %p356_p3, %p350_p0 }
   0xc   :  { %343 = vmatpush3.bf16.msra.mxu0 %v342_v20 }
  0xda   :  { %v99_v15 = vpop.f32.mrb[0].mxu0 }
  0xdb   :  { %v103_v16 = vmax.f32 %v99_v15, 0.0  ;;  %v305_v17 = vpop.f32.mrb[1].mxu0 }
  0xdd   :  { %315 = vmatmul.mubr.msk.f32.vlgmr.msra.gmra.mrb[0].mxu1 %vm108_vm5, %v103_v16 }
 0x1b0   :  { %v178_v26 = vpop.f32.mrb[0].mxu1 }
 0x1b1   :  { %v179_v27 = vadd.f32 %v178_v26, %v107_v25  ;;  %v316_v28 = vpop.f32.mrb[1].mxu1 }
 0x1b3   :  { %v182_v29 = vmax.f32 %v179_v27, 0.0 }
 0x1b5   :  { %326 = vmatmul.mubr.msk.f32.vlgmr.msra.gmra.mrb[2].mxu0 %vm108_vm5, %v182_v29 }
 0x288   :  { %v256_v32 = vpop.f32.mrb[2].mxu0 }
 0x289   :  { %v257_v34 = vadd.f32 %v256_v32, %v186_v31  ;;  %v327_v35 = vpop.f32.mrb[3].mxu0 }
 0x28b   :  { %v263_v36 = vmax.f32 %v257_v34, -20.0 }
 0x28d   :  { %v264_v37 = vmin.f32 %v263_v36, 2.0 }
 0x28f   :  { %v265_v38 = vsel %vm262_vm6, %v264_v37, %v257_v34 }
 0x290   :  { %267 = vst.msk [vmem:[#allocation2] sm:$0xff] %vm266_vm7, %v265_v38 }
 0x291   :  { %360 = shalt.err (!%p357_p4)
}
 0x292   :  { %s361_s10 = scalar_lea.hbm %s448_s2, 128 }
 0x293   :  { %p362_p5 = scmp.ne.s32.totalorder %s448_s2, %s361_s10  ;;  %p365_p6 = scmp.lt.u32.totalorder %s361_s10, %s448_s2 }
 0x295   :  { %p367_p7 = pnand %p365_p6, %p362_p5 }
 0x297   :  { %370 = shalt.err (!%p367_p7)
}
 0x298   :  { %277 = dma.vmem_to_hbm [thread:$0]  %s275_s7, 128, %s448_s2, [#allocation3]  }
 0x299   :  { %371 = dma.done.wait [#allocation3], 128  }
 0x29a   :  { %372 = vsyncadd [#allocation3], 4294967168 }
 0x29b   :  { %281 = vsyncpa [#allocation3], 1 }

</bundles_post_ra>
